<compile_context>
chip_gen: v7x
topology: tpu7x:2x2x1
jax: 0.10.0
libtpu: 0.0.40
codegen_flags: <defaults>
</compile_context>

<pallas_src>
import functools

import jax
import jax.numpy as jnp
from jax.experimental import pallas as pl
from jax.experimental.pallas import tpu as pltpu


def _focal_kernel(x_ref, t_ref, alpha_ref, out_ref, *, gamma, valid_len, tile):
    j = pl.program_id(1)

    x = x_ref[0].astype(jnp.float32)                      # (C, T)
    C, T = x.shape

    # Numerically stable log-softmax over the class (sublane) axis.
    m = jnp.max(x, axis=0, keepdims=True)                 # (1, T)
    z = x - m
    lse = jnp.log(jnp.sum(jnp.exp(z), axis=0, keepdims=True))   # (1, T)

    # Gather z_t and alpha_t with a one-hot mask over the class axis
    # (no dynamic gather on TPU).
    t = t_ref[0]                                          # (1, T) int32
    row = jax.lax.broadcasted_iota(jnp.int32, (C, T), 0)
    onehot = (row == t).astype(jnp.float32)               # (C, T)

    zt = jnp.sum(onehot * z, axis=0, keepdims=True)       # (1, T)  = x_t - m
    at = jnp.sum(onehot * alpha_ref[...], axis=0, keepdims=True)  # (1, T)

    logpt = zt - lse                                      # (1, T)
    pt = jnp.exp(logpt)

    g = float(gamma)
    if g == 0.0:
        focal = jnp.ones_like(pt)
    elif g == int(g) and 0 < int(g) <= 8:
        u = 1.0 - pt
        focal = u
        for _ in range(int(g) - 1):
            focal = focal * u
    else:
        focal = jnp.power(jnp.maximum(1.0 - pt, 0.0), jnp.float32(g))

    loss = -(focal * (at * logpt))                        # (1, T)

    # Mask lanes past the true spatial extent (ragged last tile / padding).
    pos = j * tile + jax.lax.broadcasted_iota(jnp.int32, (1, T), 1)
    loss = jnp.where(pos < valid_len, loss, 0.0)

    # One partial sum per tile, written to this tile's own (lane-dense) block.
    s = jnp.sum(loss)
    out_ref[...] = jnp.full((1, 1, 1, 128), s, dtype=jnp.float32)


def focal_loss(logits, target, *, gamma=2.0, alpha=None, size_average=True,
               tile=None):
    """logits: (N, C, H, W) or (N, C); target: matching int class ids."""
    logits = jnp.asarray(logits)            # keep native dtype on the wire
    target = jnp.asarray(target, jnp.int32)

    if logits.ndim > 2:
        N, C = logits.shape[0], logits.shape[1]
        x = logits.reshape(N, C, -1)        # (B, C, L): free, no transpose
        t = target.reshape(N, 1, -1)        # (B, 1, L)
    else:
        N, C = logits.shape
        x = logits.T.reshape(1, C, N)       # small transpose only for 2-D inputs
        t = target.reshape(1, 1, N)
    B, _, L = x.shape
    M = B * L                               # true number of rows (for mean)

    # alpha vector, shape (C, 1) for sublane-broadcast inside the kernel.
    if alpha is None:
        alpha_vec = jnp.ones((C, 1), jnp.float32)
    elif isinstance(alpha, (float, int)):
        if C != 2:
            raise ValueError("scalar alpha implies exactly 2 classes")
        alpha_vec = jnp.array([[float(alpha)], [1.0 - float(alpha)]],
                              jnp.float32)
    else:
        alpha_vec = jnp.asarray(alpha, jnp.float32).reshape(C, 1)

    # Lane tile: multiple of 128, ~2 MiB of logits per block, capped.
    itemsize = x.dtype.itemsize
    if tile is None:
        tile = (2 * 1024 * 1024) // max(C * itemsize, 1)
    tile = int(tile)
    tile = max(128, min(tile, 16384))
    tile = (tile // 128) * 128
    l_pad = pl.cdiv(L, 128) * 128
    tile = min(tile, l_pad)

    if l_pad != L:
        x = jnp.pad(x, ((0, 0), (0, 0), (0, l_pad - L)))
        t = jnp.pad(t, ((0, 0), (0, 0), (0, l_pad - L)))

    num_j = pl.cdiv(l_pad, tile)
    grid = (B, num_j)

    partial = pl.pallas_call(
        functools.partial(_focal_kernel, gamma=float(gamma), valid_len=L,
                          tile=tile),
        out_shape=jax.ShapeDtypeStruct((B, num_j, 1, 128), jnp.float32),
        grid_spec=pltpu.PrefetchScalarGridSpec(
            num_scalar_prefetch=0,
            grid=grid,
            in_specs=[
                pl.BlockSpec((1, C, tile), lambda b, j: (b, 0, j)),   # logits
                pl.BlockSpec((1, 1, tile), lambda b, j: (b, 0, j)),   # target
                pl.BlockSpec((C, 1), lambda b, j: (0, 0)),            # alpha
            ],
            out_specs=pl.BlockSpec((1, 1, 1, 128),
                                   lambda b, j: (b, j, 0, 0)),        # partials
        ),
        compiler_params=pltpu.CompilerParams(
            dimension_semantics=("parallel", "parallel"),
            vmem_limit_bytes=32 * 1024 * 1024),
    )(x, t, alpha_vec)

    loss_sum = jnp.sum(partial[:, :, 0, 0])   # tiny final reduction in JAX
    return loss_sum / M if size_average else loss_sum


def _focal_loss_ref(logits, target, gamma, alpha, size_average):
    logits = jnp.asarray(logits, jnp.float32)
    if logits.ndim > 2:
        N, C = logits.shape[0], logits.shape[1]
        x = logits.reshape(N, C, -1).transpose(0, 2, 1).reshape(-1, C)
    else:
        x = logits
    t = jnp.asarray(target, jnp.int32).reshape(-1)
    logp = jax.nn.log_softmax(x, axis=1)
    logpt = jnp.take_along_axis(logp, t[:, None], axis=1)[:, 0]
    pt = jnp.exp(logpt)
    if alpha is not None:
        if isinstance(alpha, (float, int)):
            a = jnp.array([alpha, 1.0 - alpha], jnp.float32)
        else:
            a = jnp.asarray(alpha, jnp.float32)
        logpt = logpt * a[t]
    loss = -((1.0 - pt) ** gamma) * logpt
    return loss.mean() if size_average else loss.sum()


if __name__ == "__main__":
    key = jax.random.PRNGKey(0)
    k1, k2 = jax.random.split(key)

    N, C, H, W = 2, 4, 16, 16
    logits = jax.random.normal(k1, (N, C, H, W), jnp.float32)
    target = jax.random.randint(k2, (N, H, W), 0, C, jnp.int32)

    gamma = 2.0
    alpha = [0.1, 0.2, 0.3, 0.4]   # per-class alpha (list form in the module)

    out_mean = focal_loss(logits, target, gamma=gamma, alpha=alpha,
                          size_average=True)
    out_mean = jax.block_until_ready(out_mean)
    ref_mean = _focal_loss_ref(logits, target, gamma, alpha, True)
    assert jnp.allclose(out_mean, ref_mean, rtol=1e-5, atol=1e-6), (out_mean,
                                                                    ref_mean)

    out_sum = focal_loss(logits, target, gamma=gamma, alpha=alpha,
                         size_average=False)
    out_sum = jax.block_until_ready(out_sum)
    ref_sum = _focal_loss_ref(logits, target, gamma, alpha, False)
    assert jnp.allclose(out_sum, ref_sum, rtol=1e-5, atol=1e-5), (out_sum,
                                                                  ref_sum)

    print("KERNEL_OK")
</pallas_src>

<mosaic_0001>
module attributes {stable_mosaic.version = 11 : i64} {
  func.func @_focal_kernel(%arg0: i32, %arg1: i32, %arg2: memref<1x4x256xf32, #tpu.memory_space<vmem>>, %arg3: memref<1x1x256xi32, #tpu.memory_space<vmem>>, %arg4: memref<4x1xf32, #tpu.memory_space<vmem>>, %arg5: memref<1x1x1x128xf32, #tpu.memory_space<vmem>>) attributes {dimension_semantics = [#tpu.dimension_semantics<parallel>, #tpu.dimension_semantics<parallel>], iteration_bounds = array<i64: 2, 1>, scalar_prefetch = 0 : i64, scratch_operands = 0 : i64, tpu.core_type = #tpu.core_type<tc>, window_params = [{transform_indices = @transform_0, window_bounds = array<i64: 1, 4, 256>}, {transform_indices = @transform_1, window_bounds = array<i64: 1, 1, 256>}, {pipeline_mode = #tpu.pipeline_mode<synchronous>, transform_indices = @transform_2, window_bounds = array<i64: 4, 1>}, {transform_indices = @transform_3, window_bounds = array<i64: 1, 1, 1, 128>}]} {
    %c0 = arith.constant 0 : index
    %c0_0 = arith.constant 0 : index
    %c0_1 = arith.constant 0 : index
    %0 = vector.load %arg2[%c0, %c0_0, %c0_1] : memref<1x4x256xf32, #tpu.memory_space<vmem>>, vector<1x4x256xf32>
    %1 = vector.shape_cast %0 : vector<1x4x256xf32> to vector<4x256xf32>
    %cst = arith.constant dense<0xFF800000> : vector<256xf32>
    %2 = vector.multi_reduction <maximumf>, %1, %cst [0] : vector<4x256xf32> to vector<256xf32>
    %3 = vector.shape_cast %2 : vector<256xf32> to vector<1x256xf32>
    %4 = vector.broadcast %3 : vector<1x256xf32> to vector<4x256xf32>
    %5 = arith.subf %1, %4 : vector<4x256xf32>
    %6 = math.exp %5 : vector<4x256xf32>
    %cst_2 = arith.constant dense<0.000000e+00> : vector<256xf32>
    %7 = vector.multi_reduction <add>, %6, %cst_2 [0] : vector<4x256xf32> to vector<256xf32>
    %8 = vector.shape_cast %7 : vector<256xf32> to vector<1x256xf32>
    %9 = math.log %8 : vector<1x256xf32>
    %c0_3 = arith.constant 0 : index
    %c0_4 = arith.constant 0 : index
    %c0_5 = arith.constant 0 : index
    %10 = vector.load %arg3[%c0_3, %c0_4, %c0_5] : memref<1x1x256xi32, #tpu.memory_space<vmem>>, vector<1x1x256xi32>
    %11 = vector.shape_cast %10 : vector<1x1x256xi32> to vector<1x256xi32>
    %12 = tpu.iota {dimensions = array<i32: 0>} : vector<4x256xi32>
    %13 = vector.broadcast %11 : vector<1x256xi32> to vector<4x256xi32>
    %14 = arith.cmpi eq, %12, %13 : vector<4x256xi32>
    %15 = arith.extui %14 : vector<4x256xi1> to vector<4x256xi32>
    %16 = arith.sitofp %15 : vector<4x256xi32> to vector<4x256xf32>
    %17 = arith.mulf %16, %5 : vector<4x256xf32>
    %cst_6 = arith.constant dense<0.000000e+00> : vector<256xf32>
    %18 = vector.multi_reduction <add>, %17, %cst_6 [0] : vector<4x256xf32> to vector<256xf32>
    %19 = vector.shape_cast %18 : vector<256xf32> to vector<1x256xf32>
    %c0_7 = arith.constant 0 : index
    %c0_8 = arith.constant 0 : index
    %20 = vector.load %arg4[%c0_7, %c0_8] : memref<4x1xf32, #tpu.memory_space<vmem>>, vector<4x1xf32>
    %21 = vector.broadcast %20 : vector<4x1xf32> to vector<4x256xf32>
    %22 = arith.mulf %16, %21 : vector<4x256xf32>
    %cst_9 = arith.constant dense<0.000000e+00> : vector<256xf32>
    %23 = vector.multi_reduction <add>, %22, %cst_9 [0] : vector<4x256xf32> to vector<256xf32>
    %24 = vector.shape_cast %23 : vector<256xf32> to vector<1x256xf32>
    %25 = arith.subf %19, %9 : vector<1x256xf32>
    %26 = math.exp %25 : vector<1x256xf32>
    %cst_10 = arith.constant 1.000000e+00 : f32
    %27 = vector.broadcast %cst_10 : f32 to vector<1x256xf32>
    %28 = arith.subf %27, %26 : vector<1x256xf32>
    %29 = arith.mulf %28, %28 : vector<1x256xf32>
    %30 = arith.mulf %24, %25 : vector<1x256xf32>
    %31 = arith.mulf %29, %30 : vector<1x256xf32>
    %cst_11 = arith.constant 0.000000e+00 : f32
    %32 = vector.broadcast %cst_11 : f32 to vector<1x256xf32>
    %33 = arith.subf %32, %31 : vector<1x256xf32>
    %c256_i32 = arith.constant 256 : i32
    %34 = arith.muli %arg1, %c256_i32 : i32
    %35 = tpu.iota {dimensions = array<i32: 1>} : vector<1x256xi32>
    %36 = vector.broadcast %34 : i32 to vector<1x256xi32>
    %37 = arith.addi %36, %35 : vector<1x256xi32>
    %c256_i32_12 = arith.constant 256 : i32
    %38 = vector.broadcast %c256_i32_12 : i32 to vector<1x256xi32>
    %39 = arith.cmpi slt, %37, %38 : vector<1x256xi32>
    %cst_13 = arith.constant 0.000000e+00 : f32
    %40 = vector.broadcast %cst_13 : f32 to vector<1x256xf32>
    %41 = arith.select %39, %33, %40 : vector<1x256xi1>, vector<1x256xf32>
    %42 = vector.shape_cast %41 : vector<1x256xf32> to vector<1x1x256xf32>
    %cst_14 = arith.constant dense<0.000000e+00> : vector<1xf32>
    %43 = vector.multi_reduction <add>, %42, %cst_14 [1, 2] : vector<1x1x256xf32> to vector<1xf32>
    %44 = vector.shape_cast %43 : vector<1xf32> to vector<1x1x1xf32>
    %45 = vector.extract %44[0, 0, 0] : f32 from vector<1x1x1xf32>
    %46 = vector.broadcast %45 : f32 to vector<1x1x1x128xf32>
    %c0_15 = arith.constant 0 : index
    %c0_16 = arith.constant 0 : index
    %c0_17 = arith.constant 0 : index
    %c0_18 = arith.constant 0 : index
    %47 = vector.load %arg5[%c0_15, %c0_16, %c0_17, %c0_18] : memref<1x1x1x128xf32, #tpu.memory_space<vmem>>, vector<1x1x1x128xf32>
    tpu.vector_store %arg5[%c0_15, %c0_16, %c0_17, %c0_18], %46 {strides = array<i32>} : memref<1x1x1x128xf32, #tpu.memory_space<vmem>>, vector<1x1x1x128xf32>,
    return
  }
  func.func @transform_0(%arg0: i32, %arg1: i32) -> (i32, i32, i32) {
    %c0_i32 = arith.constant 0 : i32
    %c0_i32_0 = arith.constant 0 : i32
    return %arg0, %c0_i32, %arg1 : i32, i32, i32
  }
  func.func @transform_1(%arg0: i32, %arg1: i32) -> (i32, i32, i32) {
    %c0_i32 = arith.constant 0 : i32
    %c0_i32_0 = arith.constant 0 : i32
    return %arg0, %c0_i32, %arg1 : i32, i32, i32
  }
  func.func @transform_2(%arg0: i32, %arg1: i32) -> (i32, i32) {
    %c0_i32 = arith.constant 0 : i32
    %c0_i32_0 = arith.constant 0 : i32
    %c0_i32_1 = arith.constant 0 : i32
    return %c0_i32, %c0_i32_0 : i32, i32
  }
  func.func @transform_3(%arg0: i32, %arg1: i32) -> (i32, i32, i32, i32) {
    %c0_i32 = arith.constant 0 : i32
    %c0_i32_0 = arith.constant 0 : i32
    %c0_i32_1 = arith.constant 0 : i32
    return %arg0, %arg1, %c0_i32, %c0_i32_0 : i32, i32, i32, i32
  }
}

</mosaic_0001>

<bundles_post_ra>
// kernel: tpu_custom_call.1
= control target key start
LH: loop header
LB: loop body
LE: loop exit
PB: predicated region body
PF: predicated region fallthrough
CT: control target
= control target key end

     0   :  { %8 = vsyncpa [#allocation3], 0  ;;  %s913_s0 = inlined_call_operand.hbm [shape: f32[2,4,256], index: 0, kind: input, shape index: {}]   ;;  %s914_s1 = inlined_call_operand.vmem [shape: s32[2,1,256], index: 1, kind: input, shape index: {}]   ;;  %s915_s2 = inlined_call_operand.vmem [shape: f32[4,1], index: 2, kind: input, shape index: {}]   ;;  %s916_s3 = inlined_call_operand.hbm [shape: f32[2,1,1,128], index: 3, kind: output, shape index: {}]  }
   0x1   :  { %10 = vsyncpa [#allocation3 + $0x1], 0 }
   0x2   :  { %11 = vsyncpa [#allocation4], 0 }
   0x3   :  { %13 = vsyncpa [#allocation4 + $0x1], 0  ;;  %s724_s12 = smov 0   ;;  %s726_s13 = smov 0  }
   0x4   :  { %s728_s14 = smov 0   ;;  %s730_s15 = smov 0  }
   0x5   :  { %s732_s16 = smov 0   ;;  %s734_s17 = smov 0  }
   0x6 LB: > { %s492_s18 = sadd.s32 4294967295, %s698_s17   ;;  %s493_s19 = sadd.s32 4294967294, %s698_s17   ;;  %s698_s17 = sphi %s734_s17, %s19_s17   ;;  %s694_s16 = sphi %s732_s16, %s932_s16   ;;  %s690_s15 = sphi %s730_s15, %s931_s15   ;;  %s686_s14 = sphi %s728_s14, %s930_s14   ;;  %s682_s13 = sphi %s726_s13, %s929_s13   ;;  %s678_s12 = sphi %s724_s12, %s928_s12  }
   0x7   : > { %s31_s20 = sadd.s32 1, %s694_s16  ;;  %s40_s21 = sadd.s32 1, %s686_s14 }
   0x8   : > { %p33_p0 = scmp.ge.s32.totalorder %s31_s20, 2  ;;  %p47_p1 = scmp.ne.s32.totalorder %s686_s14, %s682_s13 }
   0x9   : > { %p48_p2 = scmp.eq.s32.totalorder %s698_s17, 0  ;;  %p53_p3 = scmp.ne.s32.totalorder %s682_s13, %s678_s12 }
   0xa   : > { %s934_s20 = smov (%p33_p0, %s31_s20), 0  ;;  %p54_p5 = scmp.eq.s32.totalorder %s492_s18, 0 }
   0xb   : > { %p765_p4 = por %p48_p2, %p47_p1  ;;  %s35_s23 = ssub.s32 %s694_s16, %s934_s20 }
   0xc   : > { %p128_p6 = scmp.eq.s32.totalorder %s492_s18, 1  ;;  %p38_p7 = scmp.eq.s32.totalorder %s35_s23, 0 }
   0xd   : > { %p771_p8 = por %p54_p5, %p53_p3  ;;  %p134_p10 = scmp.eq.s32.totalorder %s493_s19, 1 }
   0xe   : > { %p775_p9 = por %p128_p6, %p47_p1  ;;  %p522_p13 = scmp.lt.s32.totalorder %s698_s17, 2 }
   0xf   : > { %s780_s26 = scalar_select %p38_p7, %s686_s14, %s40_s21  }
  0x10   : > { %s920_s25 = scalar_select %p775_p9, 1, 0 }
  0x11   : > { %p782_p11 = por %p134_p10, %p53_p3  ;;  %s157_s28 = sand.u32 1, %s686_s14  }
  0x12   : > { %s496_s29 = sshll.u32 %s157_s28, 3  ;;  %s507_s30 = sshll.u32 %s694_s16, 7 }
  0x13   : > { %s921_s27 = scalar_select %p782_p11, 1, 0 }
  0x14   : > { %s793_s6 = scalar_lea.hbm %s913_s0, %s507_s30  ;;  %s161_s7 = scalar_lea.vmem [#allocation2], %s496_s29 }
  0x15   : > { %s171_s8 = sshll.u32 %s161_s7, 4  ;;  %p799_p0 = pnand %p522_p13, %p765_p4  ;;  %s795_s8 = int_to_ptr.vmem [resolvable:$true] %s171_s8 }
  0x16   : > { %s158_s10 = scalar_lea.sflag [#allocation3], %s157_s28  ;;  %s586_s11 = scalar_lea.hbm %s793_s6, 128 }
  0x17   : > { %p587_p3 = scmp.ne.s32.totalorder %s793_s6, %s586_s11  ;;  %p588_p5 = pneg %p799_p0 }
  0x18   : > { %s591_s21 = scalar_lea.hbm %s913_s0, 256  ;;  %p592_p4 = scmp.lt.u32.totalorder %s793_s6, %s913_s0 }
  0x19   : > { %p589_p6 = pnand %p588_p5, %p587_p3  ;;  %p593_p10 = scmp.lt.u32.totalorder %s591_s21, %s586_s11 }
  0x1a   : > { %p595_p12 = scmp.lt.u32.totalorder %s586_s11, %s793_s6 }
  0x1b   : > { %p590_p7 = pneg %p589_p6  ;;  %p594_p13 = por %p593_p10, %p592_p4 }
  0x1d   : > { %p596_p1 = por %p595_p12, %p594_p13 }
  0x1f   : > { %p597_p2 = pnand %p596_p1, %p590_p7 }
  0x21   : > { %600 = shalt.err (!%p597_p2)
}
  0x22   : > { %s601_s28 = scalar_lea.vmem %s795_s8, 128  ;;  %s700_s29 = smov [#allocation2]  }
  0x23   : > { %p602_p3 = scmp.ne.s32.totalorder %s795_s8, %s601_s28  ;;  %s606_s30 = sshll.u32 %s700_s29, 4  ;;  %s607_s30 = int_to_ptr.vmem [resolvable:$false] %s606_s30 }
  0x24   : > { %s608_s4 = scalar_lea.vmem %s607_s30, 256  ;;  %p609_p9 = scmp.lt.s32.totalorder %s795_s8, %s607_s30 }
  0x25   : > { %p604_p6 = pnand %p602_p3, %p588_p5  ;;  %p610_p4 = scmp.lt.s32.totalorder %s608_s4, %s601_s28 }
  0x27   : > { %p605_p11 = pneg %p604_p6  ;;  %p611_p10 = por %p610_p4, %p609_p9 }
  0x29   : > { %p612_p12 = pnand %p611_p10, %p605_p11 }
  0x2b   : > { %615 = shalt.err (!%p612_p12)
}
  0x2c   : > { %517 = dma.hbm_to_vmem [thread:$0]  (!%p799_p0), %s793_s6, 128, %s795_s8, %s158_s10  }
  0x2d   : > { %p923_p1 = scmp.lt.s32.totalorder %s698_s17, 3  ;;  %p924_p2 = scmp.ge.s32.totalorder %s698_s17, 1 }
  0x2f   : > { %p189_p5 = pnand %p924_p2, %p923_p1 }
  0x30   : > { %s835_s5 = sand.u32 (!%p189_p5), 1, %s682_s13  }
  0x31   : > { %192 = sbr.rel (%p189_p5) target bundleno = 430 (0x1ae), region = 32  ;;  %s500_s7 = sshll.u32 (!%p189_p5), %s835_s5, 3 }
  0x32   : > { %s195_s11 = scalar_lea.sflag (!%p189_p5), [#allocation3], %s835_s5  ;;  %s198_s18 = scalar_lea.vmem (!%p189_p5), [#allocation2], %s500_s7 }
  0x38   : > { %669 = dma.done.wait (%p771_p8), %s195_s11, 128  }
  0x39   : > { %671 = vsyncadd (%p771_p8), %s195_s11, 4294967168  ;;  %v701_v0 = vmov 0   ;;  %v321_v1 = vld [vmem:[%s915_s2] sm:$0xf]  ;;  %vm242_vm0 = vcmask 1043456   ;;  %p230_p8 = scmp.lt.s32.totalorder %s690_s15, 1  ;;  %v286_v21 = vlaneseq }
  0x3a   : > { %574 = vset.pattern.permute.xlu0 %v701_v0  ;;  %v238_v2 = vld [vmem:[%s198_s18] sm:$0xff]  ;;  %v702_v36 = vmov 0.0   ;;  %vm370_vm3 = vcmask 1040384   ;;  %s227_s22 = scalar_lea.vmem [#allocation5], %s835_s5  ;;  %s504_s28 = sshll.u32 %s690_s15, 4 }
  0x3b   : > { %324 = vperm.xlu0 %574, %v321_v1   ;;  %v240_v3 = vcombine.high %v238_v2, %v238_v2  ;;  %v243_v4 = vsel %vm242_vm0, %v238_v2, -inf  ;;  %s231_s24 = scalar_select %p230_p8, %s690_s15, 1  ;;  %v287_v23 = vshrl.u32 %v286_v21, 7 }
  0x3c   : > { %v244_v6 = vrot.slane %v243_v4, 4  ;;  %s399_s23 = sshll.u32 %s227_s22, 4  ;;  %s866_s7 = scalar_lea.hbm %s916_s3, %s504_s28  ;;  %s861_s23 = int_to_ptr.vmem [resolvable:$true] %s399_s23 }
  0x3d   : > { %v250_v5 = vsel %vm242_vm0, %v240_v3, -inf  ;;  %s501_s9 = sshll.u32 %s231_s24, 1  ;;  %v290_v25 = vsub.s32 0, %v287_v23  ;;  %v294_v26 = vsub.s32 1, %v287_v23  ;;  %s386_s11 = scalar_lea.sflag [#allocation4], %s835_s5 }
  0x3e   : > { %v251_v7 = vrot.slane %v250_v5, 4  ;;  %v245_v8 = vmax.f32 %v243_v4, %v244_v6  ;;  %s236_s21 = scalar_lea.vmem %s914_s1, %s501_s9  ;;  %s616_s18 = scalar_lea.vmem %s861_s23, 16 }
  0x3f   : > { %v285_v27 = vld [vmem:[%s236_s21] sm:$0x3]  ;;  %p617_p9 = scmp.ne.s32.totalorder %s861_s23, %s616_s18  ;;  %p925_p11 = scmp.ne.s32.totalorder %s920_s25, 0 }
  0x40   : > { %v252_v9 = vmax.f32 %v250_v5, %v251_v7  ;;  %v246_v10 = vrot.slane %v245_v8, 2  ;;  %v291_v30 = vrot.slane %v285_v27, %v290_v25  ;;  %v295_v32 = vrot.slane %v285_v27, %v294_v26  ;;  %s703_s15 = smov [#allocation5]  }
  0x41   : > { %p618_p0 = pnand %p617_p9, %p925_p11  ;;  %s620_s6 = sshll.u32 %s703_s15, 4  ;;  %s621_s6 = int_to_ptr.vmem [resolvable:$false] %s620_s6 }
  0x42   : > { %v253_v11 = vrot.slane %v252_v9, 2  ;;  %v247_v12 = vmax.f32 %v245_v8, %v246_v10  ;;  %vm296_vm1 = vcmp.eq.s32.totalorder %v287_v23, %v291_v30  ;;  %vm297_vm2 = vcmp.eq.s32.totalorder %v287_v23, %v295_v32  ;;  %s622_s8 = scalar_lea.vmem %s621_s6, 32  ;;  %p623_p13 = scmp.lt.s32.totalorder %s861_s23, %s621_s6 }
  0x43   : > { %v502_v37 = vsel %vm296_vm1, 1.0, %v702_v36  ;;  %v503_v39 = vsel %vm297_vm2, 1.0, %v702_v36  ;;  %p619_p7 = pneg %p618_p0  ;;  %p624_p3 = scmp.lt.s32.totalorder %s622_s8, %s616_s18 }
  0x44   : > { %v254_v13 = vmax.f32 %v252_v9, %v253_v11  ;;  %v248_v14 = vrot.slane %v247_v12, 1 }
  0x45   : > { %p625_p6 = por %p624_p3, %p623_p13 }
  0x46   : > { %v255_v15 = vrot.slane %v254_v13, 1  ;;  %v249_v16 = vmax.f32 %v247_v12, %v248_v14 }
  0x47   : > { %p626_p4 = pnand %p625_p6, %p619_p7 }
  0x48   : > { %v256_v17 = vmax.f32 %v254_v13, %v255_v15 }
  0x4a   : > { %v259_v18 = vcombine.low %v249_v16, %v256_v17 }
  0x4c   : > { %v261_v19 = vsub.f32 %v238_v2, %v259_v18 }
  0x4e   : > { %v262_v20 = vmul.f32 1.442695, %v261_v19  ;;  %v303_v38 = vcombine.high %v261_v19, %v261_v19  ;;  %v305_v42 = vmul.f32 %v502_v37, %v261_v19 }
  0x50   : > { %576 = vpow2.f32 %v262_v20  ;;  %v306_v43 = vmul.f32 %v503_v39, %v303_v38  ;;  %v307_v46 = vsel %vm242_vm0, %v305_v42, 0.0 }
  0x51   : > { %v308_v49 = vrot.slane %v307_v46, 4 }
  0x52   : > { %v314_v47 = vsel %vm242_vm0, %v306_v43, 0.0 }
  0x53   : > { %v315_v51 = vrot.slane %v314_v47, 4  ;;  %v309_v53 = vadd.f32 %v308_v49, %v307_v46 }
  0x55   : > { %v316_v55 = vadd.f32 %v315_v51, %v314_v47  ;;  %v310_v56 = vrot.slane %v309_v53, 2 }
  0x57   : > { %v317_v57 = vrot.slane %v316_v55, 2  ;;  %v311_v58 = vadd.f32 %v310_v56, %v309_v53 }
  0x59   : > { %v318_v59 = vadd.f32 %v317_v57, %v316_v55  ;;  %v312_v60 = vrot.slane %v311_v58, 1 }
  0x5a   : > { %v577_v22 = vpop.eup %576 }
  0x5b   : > { %v265_v24 = vcombine.high %v577_v22, %v577_v22  ;;  %v267_v28 = vsel %vm242_vm0, %v577_v22, 0.0  ;;  %v319_v62 = vrot.slane %v318_v59, 1  ;;  %v313_v0 = vadd.f32 %v312_v60, %v311_v58 }
  0x5c   : > { %v268_v31 = vrot.slane %v267_v28, 4 }
  0x5d   : > { %v274_v29 = vsel %vm242_vm0, %v265_v24, 0.0  ;;  %v320_v2 = vadd.f32 %v319_v62, %v318_v59 }
  0x5e   : > { %v275_v33 = vrot.slane %v274_v29, 4  ;;  %v269_v34 = vadd.f32 %v268_v31, %v267_v28 }
  0x60   : > { %v276_v35 = vadd.f32 %v275_v33, %v274_v29  ;;  %v270_v40 = vrot.slane %v269_v34, 2 }
  0x62   : > { %v277_v41 = vrot.slane %v276_v35, 2  ;;  %v271_v44 = vadd.f32 %v270_v40, %v269_v34 }
  0x64   : > { %v278_v45 = vadd.f32 %v277_v41, %v276_v35  ;;  %v272_v48 = vrot.slane %v271_v44, 1 }
  0x66   : > { %v279_v50 = vrot.slane %v278_v45, 1  ;;  %v273_v52 = vadd.f32 %v272_v48, %v271_v44 }
  0x68   : > { %v280_v54 = vadd.f32 %v279_v50, %v278_v45  ;;  %578 = vlog2.f32 %v273_v52 }
  0x6a   : > { %580 = vlog2.f32 %v280_v54 }
  0x72   : > { %v579_v61 = vpop.eup %578 }
  0x73   : > { %v282_v1 = vmul.f32 0.6931472, %v579_v61 }
  0x74   : > { %v581_v63 = vpop.eup %580 }
  0x75   : > { %v284_v3 = vmul.f32 0.6931472, %v581_v63  ;;  %v343_v4 = vsub.f32 %v313_v0, %v282_v1 }
  0x77   : > { %v344_v5 = vsub.f32 %v320_v2, %v284_v3  ;;  %v345_v6 = vmul.f32 1.442695, %v343_v4 }
  0x79   : > { %v347_v7 = vmul.f32 1.442695, %v344_v5  ;;  %582 = vpow2.f32 %v345_v6 }
  0x7b   : > { %584 = vpow2.f32 %v347_v7 }
  0x83   : > { %v583_v15 = vpop.eup %582 }
  0x84   : > { %v349_v23 = vsub.f32 1.0, %v583_v15 }
  0x85   : > { %v585_v18 = vpop.eup %584 }
  0x86   : > { %v350_v24 = vsub.f32 1.0, %v585_v18  ;;  %v351_v29 = vmul.f32 %v349_v23, %v349_v23 }
  0x88   : > { %v352_v30 = vmul.f32 %v350_v24, %v350_v24 }
  0xba   : > { %v325_v8 = vpop.permute.xlu0 %324 }
  0xbb   : > { %v327_v9 = vmul.f32 %v502_v37, %v325_v8  ;;  %v328_v10 = vmul.f32 %v503_v39, %v325_v8 }
  0xbd   : > { %v329_v11 = vsel %vm242_vm0, %v327_v9, 0.0  ;;  %v336_v12 = vsel %vm242_vm0, %v328_v10, 0.0 }
  0xbe   : > { %v330_v13 = vrot.slane %v329_v11, 4  ;;  %v337_v14 = vrot.slane %v336_v12, 4 }
  0xc0   : > { %v331_v16 = vadd.f32 %v330_v13, %v329_v11  ;;  %v338_v17 = vadd.f32 %v337_v14, %v336_v12 }
  0xc2   : > { %v332_v19 = vrot.slane %v331_v16, 2  ;;  %v339_v20 = vrot.slane %v338_v17, 2 }
  0xc4   : > { %v333_v21 = vadd.f32 %v332_v19, %v331_v16  ;;  %v340_v22 = vadd.f32 %v339_v20, %v338_v17 }
  0xc6   : > { %v334_v25 = vrot.slane %v333_v21, 1  ;;  %v341_v26 = vrot.slane %v340_v22, 1 }
  0xc8   : > { %v335_v27 = vadd.f32 %v334_v25, %v333_v21  ;;  %v342_v28 = vadd.f32 %v341_v26, %v340_v22 }
  0xca   : > { %v353_v31 = vmul.f32 %v343_v4, %v335_v27  ;;  %v354_v32 = vmul.f32 %v344_v5, %v342_v28 }
  0xcc   : > { %v355_v33 = vmul.f32 %v353_v31, %v351_v29  ;;  %v356_v34 = vmul.f32 %v354_v32, %v352_v30 }
  0xce   : > { %v357_v35 = vsub.f32 0.0, %v355_v33  ;;  %v358_v36 = vsub.f32 0.0, %v356_v34 }
  0xd0   : > { %v371_v37 = vsel %vm370_vm3, %v357_v35, 0.0  ;;  %v372_v38 = vsel %vm370_vm3, %v358_v36, 0.0 }
  0xd1   : > { %v373_v39 = vadd.f32 %v372_v38, %v371_v37 }
  0xd3   : > { %374 = vadd.xlane.f32.xlu0 %v373_v39 }
 0x160   : > { %v375_v40 = vpop.xlane.xlu0 %374 }
 0x161   : > { %v376_v41 = vrot.slane %v375_v40, 4 }
 0x163   : > { %v377_v42 = vadd.f32 %v376_v41, %v375_v40 }
 0x165   : > { %v378_v43 = vrot.slane %v377_v42, 2 }
 0x167   : > { %v379_v44 = vadd.f32 %v378_v43, %v377_v42 }
 0x169   : > { %v380_v45 = vrot.slane %v379_v44, 1 }
 0x16b   : > { %v381_v46 = vadd.f32 %v380_v45, %v379_v44 }
 0x16d   : > { %508 = vpush %v381_v46 }
 0x19e   : > { %s509_s29 = spop %508 }
 0x19f   : > { %v383_v47 = vstv %s509_s29 }
 0x1a0   : > { %384 = vst [vmem:[%s227_s22] sm:$0x1] %v383_v47 }
 0x1a1   : > { %629 = shalt.err (!%p626_p4)
}
 0x1a2   : > { %s630_s5 = scalar_lea.hbm %s866_s7, 16  ;;  %s634_s10 = scalar_lea.hbm %s916_s3, 32 }
 0x1a3   : > { %p631_p10 = scmp.ne.s32.totalorder %s866_s7, %s630_s5  ;;  %p635_p2 = scmp.lt.u32.totalorder %s866_s7, %s916_s3 }
 0x1a4   : > { %p636_p5 = scmp.lt.u32.totalorder %s634_s10, %s630_s5  ;;  %p638_p9 = scmp.lt.u32.totalorder %s630_s5, %s866_s7 }
 0x1a5   : > { %p632_p12 = pnand %p631_p10, %p925_p11 }
 0x1a6   : > { %p637_p8 = por %p636_p5, %p635_p2 }
 0x1a7   : > { %p633_p1 = pneg %p632_p12 }
 0x1a8   : > { %p639_p0 = por %p638_p9, %p637_p8 }
 0x1aa   : > { %p640_p7 = pnand %p639_p0, %p633_p1 }
 0x1ac   : > { %643 = shalt.err (!%p640_p7)
}
 0x1ad   : > { %512 = dma.vmem_to_hbm [thread:$0]  (%p925_p11), %s861_s23, 16, %s866_s7, %s386_s11  }
 0x1ae PF: > { %s411_s22 = sand.u32 1, %s678_s12   ;;  %p926_p13 = scmp.ne.s32.totalorder %s921_s27, 0 }
 0x1af   : > { %p927_p3 = scmp.ge.s32.totalorder %s698_s17, 2  ;;  %s412_s28 = scalar_lea.sflag [#allocation4], %s411_s22 }
 0x1b1   : > { %p519_p6 = pnand %p927_p3, %p926_p13 }
 0x1b3   : > { %673 = dma.done.wait (!%p519_p6), %s412_s28, 16  }
 0x1b4   : > { %675 = vsyncadd (!%p519_p6), %s412_s28, 4294967280  ;;  %s19_s17 = sadd.s32 1, %s698_s17   ;;  %s928_s12 = smov %s682_s13 }
 0x1b5   : > { %p16_p4 = scmp.ge.s32.totalorder %s19_s17, 4   ;;  %s929_s13 = smov %s686_s14 }
 0x1b6   : > { %s930_s14 = smov %s780_s26  ;;  %s931_s15 = smov %s694_s16 }
 0x1b7   : > { %s932_s16 = smov %s934_s20  ;;  %18 = sbr.rel (!%p16_p4) target bundleno = 6 (0x6), region = 80 }
 0x1be   :  { %416 = vsyncpa [#allocation3], 1 }
 0x1bf   :  { %418 = vsyncpa [#allocation3 + $0x1], 1 }
 0x1c0   :  { %419 = vsyncpa [#allocation4], 1 }
 0x1c1   :  { %421 = vsyncpa [#allocation4 + $0x1], 1 }

</bundles_post_ra>
